<compile_context>
chip_gen: v7x
topology: tpu7x:2x2x1
jax: 0.10.0
libtpu: 0.0.40
codegen_flags: <defaults>
</compile_context>

<pallas_src>
import functools

import jax
import jax.numpy as jnp
from jax.experimental import pallas as pl
from jax.experimental.pallas import tpu as pltpu


def _round_up(x, m):
    return (x + m - 1) // m * m


def ffm_kernel(x1_ref, x2_ref, wstk_ref, bns_ref, bnb_ref, mask_ref,
               w1t_ref, b1_ref, w2_ref, b2_ref, out_ref, xs_ref, *, Wp, inv_hw):
    # x1_ref:    (C1_p, L_in)          bf16  zero-haloed flat image 1 (row stride Wp)
    # x2_ref:    (C2_p, L_in)          bf16  zero-haloed flat image 2
    # wstk_ref:  (Cout_p, 9*Cin_pp)    bf16  stacked conv taps, K block = [tap][C1 | C2]
    # bns/bnb:   (Cout_p, 1)           f32   folded BatchNorm scale / bias
    # mask_ref:  (L_out, 1)            f32   valid-pixel mask column (pool reduction)
    # w1t_ref:   (Cout_p, Cout_p)      f32   conv1 weight, transposed (in-ch on sublanes)
    # b1_ref:    (1, Cout_p)           f32
    # w2_ref:    (Cout_p, Cout_p)      f32   conv2 weight (out-ch on sublanes)
    # b2_ref:    (Cout_p, 1)           f32
    # out_ref:   (Cout, L_out)         f32   only the real output channels
    # xs_ref:    (9*Cin_pp, L_out)     bf16  VMEM scratch: stacked, lane-shifted operand
    c1p = x1_ref.shape[0]
    c2p = x2_ref.shape[0]
    cin_pp = c1p + c2p
    L_out = xs_ref.shape[1]
    cout = out_ref.shape[0]

    # Assemble the stacked conv operand once: each tap (dy, dx) is a constant lane
    # offset dy*Wp + dx into the haloed flat image (shift done once, on the ref).
    for i in range(9):
        dy, dx = divmod(i, 3)
        off = dy * Wp + dx
        base = i * cin_pp
        xs_ref[base:base + c1p, :] = x1_ref[:, off:off + L_out]
        xs_ref[base + c1p:base + cin_pp, :] = x2_ref[:, off:off + L_out]

    # Single MXU matmul with K = 9 * Cin_pp; accumulation stays inside the MXU.
    acc = jnp.dot(wstk_ref[...], xs_ref[...],
                  preferred_element_type=jnp.float32)          # (Cout_p, L_out)

    # Folded BatchNorm (eval mode) + ReLU, f32 epilogue.
    feat = jnp.maximum(acc * bns_ref[...] + bnb_ref[...], 0.0)  # (Cout_p, L_out)

    # AdaptiveAvgPool2d((1,1)): masked mean via an MXU dot against the mask column
    # (saves a full-size VPU multiply over feat; VALU is the contended slot here).
    pooled = jnp.dot(feat, mask_ref[...],
                     preferred_element_type=jnp.float32) * inv_hw     # (Cout_p, 1)

    # relu(conv1(pooled)): h1[o] = sum_i w1[o,i] * pooled[i]   (sublane reduce -> row)
    h1 = jnp.maximum(
        jnp.sum(w1t_ref[...] * pooled, axis=0, keepdims=True) + b1_ref[...], 0.0)  # (1, Cout_p)
    # sigmoid(conv2(h1)): s[o] = sigmoid(sum_i w2[o,i] * h1[i]) (lane reduce -> column)
    s = jax.nn.sigmoid(
        jnp.sum(w2_ref[...] * h1, axis=1, keepdims=True) + b2_ref[...])             # (Cout_p, 1)

    # feature * attn + feature == feature * (1 + attn); store only the real Cout rows.
    out_ref[...] = feat[:cout, :] * (1.0 + s[:cout, :])


def feature_fusion_forward(input_1, input_2, params):
    """input_1, input_2: NCHW float32. Returns NCHW float32 (matches the PyTorch module)."""
    N, C1, H, W = input_1.shape
    C2 = input_2.shape[1]
    Cout = params["conv_w"].shape[0]
    C1_real, C2_real = C1, C2

    Wp = W + 2
    C1p = _round_up(C1, 16)          # bf16 operand channel blocks padded to full
    C2p = _round_up(C2, 16)          # sublane packing (16 rows / packed vreg group)
    Cin_pp = C1p + C2p
    Cout_p = _round_up(Cout, 16)
    L_out = _round_up(H * Wp, 128)               # padded-row flat output length (lane-dense)
    L_in = _round_up(2 * Wp + 2 + L_out, 128)    # covers the largest (dy, dx) lane shift

    def flat_halo(x, cp):
        # One fused pad+cast pass: W halo + channel pad, flatten (bitcast), then the
        # top-halo row (Wp zeros) + tail zeros, emitted directly as bf16.
        n, c, h, _ = x.shape
        xw = jnp.pad(x, ((0, 0), (0, cp - c), (0, 0), (1, 1)))          # (N, cp, H, Wp)
        flat = xw.reshape(n, cp, h * Wp)
        return jnp.pad(flat, ((0, 0), (0, 0), (Wp, L_in - Wp - h * Wp))).astype(jnp.bfloat16)

    x1f = flat_halo(input_1, C1p)
    x2f = flat_halo(input_2, C2p)

    # Conv weight (Cout, Cin, 3, 3) -> stacked (Cout_p, 9*Cin_pp) bf16; K block order is
    # [tap dy*3+dx][input_1 channels (padded) | input_2 channels (padded)], matching xs_ref.
    wa = jnp.pad(params["conv_w"][:, :C1_real],
                 ((0, Cout_p - Cout), (0, C1p - C1_real), (0, 0), (0, 0)))
    wb = jnp.pad(params["conv_w"][:, C1_real:],
                 ((0, Cout_p - Cout), (0, C2p - C2_real), (0, 0), (0, 0)))
    wa = jnp.transpose(wa, (0, 2, 3, 1)).reshape(Cout_p, 9, C1p)
    wb = jnp.transpose(wb, (0, 2, 3, 1)).reshape(Cout_p, 9, C2p)
    wstk = jnp.concatenate([wa, wb], axis=2).reshape(Cout_p, 9 * Cin_pp).astype(jnp.bfloat16)

    # Fold BatchNorm (eval mode, running stats) into per-channel scale / bias columns.
    scale = params["bn_gamma"] / jnp.sqrt(params["bn_var"] + 1e-5)
    bias = params["bn_beta"] - params["bn_mean"] * scale
    bns = jnp.pad(scale, (0, Cout_p - Cout)).reshape(Cout_p, 1)
    bnb = jnp.pad(bias, (0, Cout_p - Cout)).reshape(Cout_p, 1)

    # Valid-pixel mask column (padded-row layout has Wp-W junk columns per row + tail).
    idx = jnp.arange(L_out, dtype=jnp.int32)
    mask = ((idx < H * Wp) & ((idx % Wp) < W)).astype(jnp.float32).reshape(L_out, 1)

    # 1x1 attention convs as small dense matrices (zero-padded to Cout_p).
    w1t = jnp.pad(params["conv1_w"].reshape(Cout, Cout).T,
                  ((0, Cout_p - Cout), (0, Cout_p - Cout)))
    b1 = jnp.pad(params["conv1_b"], (0, Cout_p - Cout)).reshape(1, Cout_p)
    w2 = jnp.pad(params["conv2_w"].reshape(Cout, Cout),
                 ((0, Cout_p - Cout), (0, Cout_p - Cout)))
    b2 = jnp.pad(params["conv2_b"], (0, Cout_p - Cout)).reshape(Cout_p, 1)

    kernel = functools.partial(ffm_kernel, Wp=Wp, inv_hw=1.0 / (H * W))

    # TODO(synk): for production-scale H*W that overflow v7x's 64 MiB VMEM (or N==1 on
    # v7x), switch to a two-phase HW-tiled pipeline (phase 1 accumulates the masked
    # global pool across L tiles, phase 2 applies the (1+sigmoid) scale) with a second
    # parallel grid axis; at image sizes that fit VMEM this single-pass, one-block-per-
    # image form avoids an extra HBM round trip over `feat` and is faster.
    out = pl.pallas_call(
        kernel,
        out_shape=jax.ShapeDtypeStruct((N, Cout, L_out), jnp.float32),
        grid=(N,),
        in_specs=[
            pl.BlockSpec((None, C1p, L_in), lambda b: (b, 0, 0)),
            pl.BlockSpec((None, C2p, L_in), lambda b: (b, 0, 0)),
            pl.BlockSpec((Cout_p, 9 * Cin_pp), lambda b: (0, 0)),
            pl.BlockSpec((Cout_p, 1), lambda b: (0, 0)),
            pl.BlockSpec((Cout_p, 1), lambda b: (0, 0)),
            pl.BlockSpec((L_out, 1), lambda b: (0, 0)),
            pl.BlockSpec((Cout_p, Cout_p), lambda b: (0, 0)),
            pl.BlockSpec((1, Cout_p), lambda b: (0, 0)),
            pl.BlockSpec((Cout_p, Cout_p), lambda b: (0, 0)),
            pl.BlockSpec((Cout_p, 1), lambda b: (0, 0)),
        ],
        out_specs=pl.BlockSpec((None, Cout, L_out), lambda b: (b, 0, 0)),
        scratch_shapes=[pltpu.VMEM((9 * Cin_pp, L_out), jnp.bfloat16)],
        compiler_params=pltpu.CompilerParams(
            dimension_semantics=("parallel",),        # megacore sharding over batch
            vmem_limit_bytes=48 * 1024 * 1024),       # <= v7x 64 MiB physical; ample on v5e/v6e
    )(x1f, x2f, wstk, bns, bnb, mask, w1t, b1, w2, b2)

    # Channels already lead and only real Cout rows were written: NCHW is slice + reshape.
    # TODO(synk): downstream consumers could take the padded (Cout, L_out) layout directly
    # and skip this small copy.
    return out[:, :, :H * Wp].reshape(N, Cout, H, Wp)[:, :, :, :W]


def reference_forward(input_1, input_2, params):
    """Pure-JAX NCHW reference mirroring the PyTorch forward (BN in eval mode)."""
    x = jnp.concatenate([input_1, input_2], axis=1)
    dn = ("NCHW", "OIHW", "NCHW")
    feat = jax.lax.conv_general_dilated(
        x, params["conv_w"], (1, 1), ((1, 1), (1, 1)), dimension_numbers=dn)
    scale = params["bn_gamma"] / jnp.sqrt(params["bn_var"] + 1e-5)
    bias = params["bn_beta"] - params["bn_mean"] * scale
    feat = jnp.maximum(feat * scale[None, :, None, None] + bias[None, :, None, None], 0.0)
    pooled = jnp.mean(feat, axis=(2, 3), keepdims=True)
    h1 = jax.lax.conv_general_dilated(
        pooled, params["conv1_w"], (1, 1), "VALID", dimension_numbers=dn)
    h1 = jnp.maximum(h1 + params["conv1_b"][None, :, None, None], 0.0)
    s = jax.lax.conv_general_dilated(
        h1, params["conv2_w"], (1, 1), "VALID", dimension_numbers=dn)
    s = jax.nn.sigmoid(s + params["conv2_b"][None, :, None, None])
    return feat * s + feat


def init_params(key, in_channels, num_classes):
    ks = jax.random.split(key, 8)
    return {
        "conv_w": 0.1 * jax.random.normal(ks[0], (num_classes, in_channels, 3, 3), jnp.float32),
        "bn_gamma": 1.0 + 0.1 * jax.random.normal(ks[1], (num_classes,), jnp.float32),
        "bn_beta": 0.1 * jax.random.normal(ks[2], (num_classes,), jnp.float32),
        "bn_mean": 0.1 * jax.random.normal(ks[3], (num_classes,), jnp.float32),
        "bn_var": jax.random.uniform(ks[4], (num_classes,), jnp.float32, 0.5, 1.5),
        "conv1_w": 0.1 * jax.random.normal(ks[5], (num_classes, num_classes, 1, 1), jnp.float32),
        "conv1_b": 0.1 * jax.random.normal(ks[6], (num_classes,), jnp.float32),
        "conv2_w": 0.1 * jax.random.normal(ks[7], (num_classes, num_classes, 1, 1), jnp.float32),
        "conv2_b": jnp.zeros((num_classes,), jnp.float32),
    }


if __name__ == "__main__":
    key = jax.random.PRNGKey(0)
    k1, k2, kp = jax.random.split(key, 3)

    N, C1, C2, H, W = 2, 4, 4, 16, 16
    num_classes = 4
    in_channels = C1 + C2

    input_1 = jax.random.normal(k1, (N, C1, H, W), jnp.float32)
    input_2 = jax.random.normal(k2, (N, C2, H, W), jnp.float32)
    params = init_params(kp, in_channels, num_classes)

    out = jax.block_until_ready(feature_fusion_forward(input_1, input_2, params))
    ref = jax.block_until_ready(reference_forward(input_1, input_2, params))

    assert out.shape == (N, num_classes, H, W)
    # bf16 matmul operands (f32 accumulation) vs pure-f32 reference -> bf16-level tolerance.
    assert jnp.allclose(out, ref, atol=3e-2, rtol=3e-2), \
        f"max abs err {jnp.max(jnp.abs(out - ref))}"
    print("KERNEL_OK")
</pallas_src>

<mosaic_0001>
module attributes {stable_mosaic.version = 11 : i64} {
  func.func @ffm_kernel(%arg0: i32, %arg1: memref<1x16x512xbf16, #tpu.memory_space<vmem>>, %arg2: memref<1x16x512xbf16, #tpu.memory_space<vmem>>, %arg3: memref<16x288xbf16, #tpu.memory_space<vmem>>, %arg4: memref<16x1xf32, #tpu.memory_space<vmem>>, %arg5: memref<16x1xf32, #tpu.memory_space<vmem>>, %arg6: memref<384x1xf32, #tpu.memory_space<vmem>>, %arg7: memref<16x16xf32, #tpu.memory_space<vmem>>, %arg8: memref<1x16xf32, #tpu.memory_space<vmem>>, %arg9: memref<16x16xf32, #tpu.memory_space<vmem>>, %arg10: memref<16x1xf32, #tpu.memory_space<vmem>>, %arg11: memref<1x4x384xf32, #tpu.memory_space<vmem>>, %arg12: memref<288x384xbf16, #tpu.memory_space<vmem>>) attributes {dimension_semantics = [#tpu.dimension_semantics<parallel>], iteration_bounds = array<i64: 2>, scalar_prefetch = 0 : i64, scratch_operands = 1 : i64, tpu.core_type = #tpu.core_type<tc>, window_params = [{transform_indices = @transform_0, window_bounds = array<i64: 1, 16, 512>}, {transform_indices = @transform_1, window_bounds = array<i64: 1, 16, 512>}, {pipeline_mode = #tpu.pipeline_mode<synchronous>, transform_indices = @transform_2, window_bounds = array<i64: 16, 288>}, {pipeline_mode = #tpu.pipeline_mode<synchronous>, transform_indices = @transform_3, window_bounds = array<i64: 16, 1>}, {pipeline_mode = #tpu.pipeline_mode<synchronous>, transform_indices = @transform_4, window_bounds = array<i64: 16, 1>}, {pipeline_mode = #tpu.pipeline_mode<synchronous>, transform_indices = @transform_5, window_bounds = array<i64: 384, 1>}, {pipeline_mode = #tpu.pipeline_mode<synchronous>, transform_indices = @transform_6, window_bounds = array<i64: 16, 16>}, {pipeline_mode = #tpu.pipeline_mode<synchronous>, transform_indices = @transform_7, window_bounds = array<i64: 1, 16>}, {pipeline_mode = #tpu.pipeline_mode<synchronous>, transform_indices = @transform_8, window_bounds = array<i64: 16, 16>}, {pipeline_mode = #tpu.pipeline_mode<synchronous>, transform_indices = @transform_9, window_bounds = array<i64: 16, 1>}, {transform_indices = @transform_10, window_bounds = array<i64: 1, 4, 384>}]} {
    %c0 = arith.constant 0 : index
    %c0_0 = arith.constant 0 : index
    %c0_1 = arith.constant 0 : index
    %0 = vector.load %arg1[%c0, %c0_0, %c0_1] : memref<1x16x512xbf16, #tpu.memory_space<vmem>>, vector<1x16x384xbf16>
    %1 = vector.shape_cast %0 : vector<1x16x384xbf16> to vector<16x384xbf16>
    %c0_2 = arith.constant 0 : index
    %c0_3 = arith.constant 0 : index
    %2 = vector.load %arg12[%c0_2, %c0_3] : memref<288x384xbf16, #tpu.memory_space<vmem>>, vector<16x384xbf16>
    tpu.vector_store %arg12[%c0_2, %c0_3], %1 {strides = array<i32>} : memref<288x384xbf16, #tpu.memory_space<vmem>>, vector<16x384xbf16>,
    %c0_4 = arith.constant 0 : index
    %c0_5 = arith.constant 0 : index
    %c0_6 = arith.constant 0 : index
    %3 = vector.load %arg2[%c0_4, %c0_5, %c0_6] : memref<1x16x512xbf16, #tpu.memory_space<vmem>>, vector<1x16x384xbf16>
    %4 = vector.shape_cast %3 : vector<1x16x384xbf16> to vector<16x384xbf16>
    %c16 = arith.constant 16 : index
    %c0_7 = arith.constant 0 : index
    %5 = vector.load %arg12[%c16, %c0_7] : memref<288x384xbf16, #tpu.memory_space<vmem>>, vector<16x384xbf16>
    tpu.vector_store %arg12[%c16, %c0_7], %4 {strides = array<i32>} : memref<288x384xbf16, #tpu.memory_space<vmem>>, vector<16x384xbf16>,
    %c0_8 = arith.constant 0 : index
    %c0_9 = arith.constant 0 : index
    %c1 = arith.constant 1 : index
    %6 = vector.load %arg1[%c0_8, %c0_9, %c1] : memref<1x16x512xbf16, #tpu.memory_space<vmem>>, vector<1x16x384xbf16>
    %7 = vector.shape_cast %6 : vector<1x16x384xbf16> to vector<16x384xbf16>
    %c32 = arith.constant 32 : index
    %c0_10 = arith.constant 0 : index
    %8 = vector.load %arg12[%c32, %c0_10] : memref<288x384xbf16, #tpu.memory_space<vmem>>, vector<16x384xbf16>
    tpu.vector_store %arg12[%c32, %c0_10], %7 {strides = array<i32>} : memref<288x384xbf16, #tpu.memory_space<vmem>>, vector<16x384xbf16>,
    %c0_11 = arith.constant 0 : index
    %c0_12 = arith.constant 0 : index
    %c1_13 = arith.constant 1 : index
    %9 = vector.load %arg2[%c0_11, %c0_12, %c1_13] : memref<1x16x512xbf16, #tpu.memory_space<vmem>>, vector<1x16x384xbf16>
    %10 = vector.shape_cast %9 : vector<1x16x384xbf16> to vector<16x384xbf16>
    %c48 = arith.constant 48 : index
    %c0_14 = arith.constant 0 : index
    %11 = vector.load %arg12[%c48, %c0_14] : memref<288x384xbf16, #tpu.memory_space<vmem>>, vector<16x384xbf16>
    tpu.vector_store %arg12[%c48, %c0_14], %10 {strides = array<i32>} : memref<288x384xbf16, #tpu.memory_space<vmem>>, vector<16x384xbf16>,
    %c0_15 = arith.constant 0 : index
    %c0_16 = arith.constant 0 : index
    %c2 = arith.constant 2 : index
    %12 = vector.load %arg1[%c0_15, %c0_16, %c2] : memref<1x16x512xbf16, #tpu.memory_space<vmem>>, vector<1x16x384xbf16>
    %13 = vector.shape_cast %12 : vector<1x16x384xbf16> to vector<16x384xbf16>
    %c64 = arith.constant 64 : index
    %c0_17 = arith.constant 0 : index
    %14 = vector.load %arg12[%c64, %c0_17] : memref<288x384xbf16, #tpu.memory_space<vmem>>, vector<16x384xbf16>
    tpu.vector_store %arg12[%c64, %c0_17], %13 {strides = array<i32>} : memref<288x384xbf16, #tpu.memory_space<vmem>>, vector<16x384xbf16>,
    %c0_18 = arith.constant 0 : index
    %c0_19 = arith.constant 0 : index
    %c2_20 = arith.constant 2 : index
    %15 = vector.load %arg2[%c0_18, %c0_19, %c2_20] : memref<1x16x512xbf16, #tpu.memory_space<vmem>>, vector<1x16x384xbf16>
    %16 = vector.shape_cast %15 : vector<1x16x384xbf16> to vector<16x384xbf16>
    %c80 = arith.constant 80 : index
    %c0_21 = arith.constant 0 : index
    %17 = vector.load %arg12[%c80, %c0_21] : memref<288x384xbf16, #tpu.memory_space<vmem>>, vector<16x384xbf16>
    tpu.vector_store %arg12[%c80, %c0_21], %16 {strides = array<i32>} : memref<288x384xbf16, #tpu.memory_space<vmem>>, vector<16x384xbf16>,
    %c0_22 = arith.constant 0 : index
    %c0_23 = arith.constant 0 : index
    %c18 = arith.constant 18 : index
    %18 = vector.load %arg1[%c0_22, %c0_23, %c18] : memref<1x16x512xbf16, #tpu.memory_space<vmem>>, vector<1x16x384xbf16>
    %19 = vector.shape_cast %18 : vector<1x16x384xbf16> to vector<16x384xbf16>
    %c96 = arith.constant 96 : index
    %c0_24 = arith.constant 0 : index
    %20 = vector.load %arg12[%c96, %c0_24] : memref<288x384xbf16, #tpu.memory_space<vmem>>, vector<16x384xbf16>
    tpu.vector_store %arg12[%c96, %c0_24], %19 {strides = array<i32>} : memref<288x384xbf16, #tpu.memory_space<vmem>>, vector<16x384xbf16>,
    %c0_25 = arith.constant 0 : index
    %c0_26 = arith.constant 0 : index
    %c18_27 = arith.constant 18 : index
    %21 = vector.load %arg2[%c0_25, %c0_26, %c18_27] : memref<1x16x512xbf16, #tpu.memory_space<vmem>>, vector<1x16x384xbf16>
    %22 = vector.shape_cast %21 : vector<1x16x384xbf16> to vector<16x384xbf16>
    %c112 = arith.constant 112 : index
    %c0_28 = arith.constant 0 : index
    %23 = vector.load %arg12[%c112, %c0_28] : memref<288x384xbf16, #tpu.memory_space<vmem>>, vector<16x384xbf16>
    tpu.vector_store %arg12[%c112, %c0_28], %22 {strides = array<i32>} : memref<288x384xbf16, #tpu.memory_space<vmem>>, vector<16x384xbf16>,
    %c0_29 = arith.constant 0 : index
    %c0_30 = arith.constant 0 : index
    %c19 = arith.constant 19 : index
    %24 = vector.load %arg1[%c0_29, %c0_30, %c19] : memref<1x16x512xbf16, #tpu.memory_space<vmem>>, vector<1x16x384xbf16>
    %25 = vector.shape_cast %24 : vector<1x16x384xbf16> to vector<16x384xbf16>
    %c128 = arith.constant 128 : index
    %c0_31 = arith.constant 0 : index
    %26 = vector.load %arg12[%c128, %c0_31] : memref<288x384xbf16, #tpu.memory_space<vmem>>, vector<16x384xbf16>
    tpu.vector_store %arg12[%c128, %c0_31], %25 {strides = array<i32>} : memref<288x384xbf16, #tpu.memory_space<vmem>>, vector<16x384xbf16>,
    %c0_32 = arith.constant 0 : index
    %c0_33 = arith.constant 0 : index
    %c19_34 = arith.constant 19 : index
    %27 = vector.load %arg2[%c0_32, %c0_33, %c19_34] : memref<1x16x512xbf16, #tpu.memory_space<vmem>>, vector<1x16x384xbf16>
    %28 = vector.shape_cast %27 : vector<1x16x384xbf16> to vector<16x384xbf16>
    %c144 = arith.constant 144 : index
    %c0_35 = arith.constant 0 : index
    %29 = vector.load %arg12[%c144, %c0_35] : memref<288x384xbf16, #tpu.memory_space<vmem>>, vector<16x384xbf16>
    tpu.vector_store %arg12[%c144, %c0_35], %28 {strides = array<i32>} : memref<288x384xbf16, #tpu.memory_space<vmem>>, vector<16x384xbf16>,
    %c0_36 = arith.constant 0 : index
    %c0_37 = arith.constant 0 : index
    %c20 = arith.constant 20 : index
    %30 = vector.load %arg1[%c0_36, %c0_37, %c20] : memref<1x16x512xbf16, #tpu.memory_space<vmem>>, vector<1x16x384xbf16>
    %31 = vector.shape_cast %30 : vector<1x16x384xbf16> to vector<16x384xbf16>
    %c160 = arith.constant 160 : index
    %c0_38 = arith.constant 0 : index
    %32 = vector.load %arg12[%c160, %c0_38] : memref<288x384xbf16, #tpu.memory_space<vmem>>, vector<16x384xbf16>
    tpu.vector_store %arg12[%c160, %c0_38], %31 {strides = array<i32>} : memref<288x384xbf16, #tpu.memory_space<vmem>>, vector<16x384xbf16>,
    %c0_39 = arith.constant 0 : index
    %c0_40 = arith.constant 0 : index
    %c20_41 = arith.constant 20 : index
    %33 = vector.load %arg2[%c0_39, %c0_40, %c20_41] : memref<1x16x512xbf16, #tpu.memory_space<vmem>>, vector<1x16x384xbf16>
    %34 = vector.shape_cast %33 : vector<1x16x384xbf16> to vector<16x384xbf16>
    %c176 = arith.constant 176 : index
    %c0_42 = arith.constant 0 : index
    %35 = vector.load %arg12[%c176, %c0_42] : memref<288x384xbf16, #tpu.memory_space<vmem>>, vector<16x384xbf16>
    tpu.vector_store %arg12[%c176, %c0_42], %34 {strides = array<i32>} : memref<288x384xbf16, #tpu.memory_space<vmem>>, vector<16x384xbf16>,
    %c0_43 = arith.constant 0 : index
    %c0_44 = arith.constant 0 : index
    %c36 = arith.constant 36 : index
    %36 = vector.load %arg1[%c0_43, %c0_44, %c36] : memref<1x16x512xbf16, #tpu.memory_space<vmem>>, vector<1x16x384xbf16>
    %37 = vector.shape_cast %36 : vector<1x16x384xbf16> to vector<16x384xbf16>
    %c192 = arith.constant 192 : index
    %c0_45 = arith.constant 0 : index
    %38 = vector.load %arg12[%c192, %c0_45] : memref<288x384xbf16, #tpu.memory_space<vmem>>, vector<16x384xbf16>
    tpu.vector_store %arg12[%c192, %c0_45], %37 {strides = array<i32>} : memref<288x384xbf16, #tpu.memory_space<vmem>>, vector<16x384xbf16>,
    %c0_46 = arith.constant 0 : index
    %c0_47 = arith.constant 0 : index
    %c36_48 = arith.constant 36 : index
    %39 = vector.load %arg2[%c0_46, %c0_47, %c36_48] : memref<1x16x512xbf16, #tpu.memory_space<vmem>>, vector<1x16x384xbf16>
    %40 = vector.shape_cast %39 : vector<1x16x384xbf16> to vector<16x384xbf16>
    %c208 = arith.constant 208 : index
    %c0_49 = arith.constant 0 : index
    %41 = vector.load %arg12[%c208, %c0_49] : memref<288x384xbf16, #tpu.memory_space<vmem>>, vector<16x384xbf16>
    tpu.vector_store %arg12[%c208, %c0_49], %40 {strides = array<i32>} : memref<288x384xbf16, #tpu.memory_space<vmem>>, vector<16x384xbf16>,
    %c0_50 = arith.constant 0 : index
    %c0_51 = arith.constant 0 : index
    %c37 = arith.constant 37 : index
    %42 = vector.load %arg1[%c0_50, %c0_51, %c37] : memref<1x16x512xbf16, #tpu.memory_space<vmem>>, vector<1x16x384xbf16>
    %43 = vector.shape_cast %42 : vector<1x16x384xbf16> to vector<16x384xbf16>
    %c224 = arith.constant 224 : index
    %c0_52 = arith.constant 0 : index
    %44 = vector.load %arg12[%c224, %c0_52] : memref<288x384xbf16, #tpu.memory_space<vmem>>, vector<16x384xbf16>
    tpu.vector_store %arg12[%c224, %c0_52], %43 {strides = array<i32>} : memref<288x384xbf16, #tpu.memory_space<vmem>>, vector<16x384xbf16>,
    %c0_53 = arith.constant 0 : index
    %c0_54 = arith.constant 0 : index
    %c37_55 = arith.constant 37 : index
    %45 = vector.load %arg2[%c0_53, %c0_54, %c37_55] : memref<1x16x512xbf16, #tpu.memory_space<vmem>>, vector<1x16x384xbf16>
    %46 = vector.shape_cast %45 : vector<1x16x384xbf16> to vector<16x384xbf16>
    %c240 = arith.constant 240 : index
    %c0_56 = arith.constant 0 : index
    %47 = vector.load %arg12[%c240, %c0_56] : memref<288x384xbf16, #tpu.memory_space<vmem>>, vector<16x384xbf16>
    tpu.vector_store %arg12[%c240, %c0_56], %46 {strides = array<i32>} : memref<288x384xbf16, #tpu.memory_space<vmem>>, vector<16x384xbf16>,
    %c0_57 = arith.constant 0 : index
    %c0_58 = arith.constant 0 : index
    %c38 = arith.constant 38 : index
    %48 = vector.load %arg1[%c0_57, %c0_58, %c38] : memref<1x16x512xbf16, #tpu.memory_space<vmem>>, vector<1x16x384xbf16>
    %49 = vector.shape_cast %48 : vector<1x16x384xbf16> to vector<16x384xbf16>
    %c256 = arith.constant 256 : index
    %c0_59 = arith.constant 0 : index
    %50 = vector.load %arg12[%c256, %c0_59] : memref<288x384xbf16, #tpu.memory_space<vmem>>, vector<16x384xbf16>
    tpu.vector_store %arg12[%c256, %c0_59], %49 {strides = array<i32>} : memref<288x384xbf16, #tpu.memory_space<vmem>>, vector<16x384xbf16>,
    %c0_60 = arith.constant 0 : index
    %c0_61 = arith.constant 0 : index
    %c38_62 = arith.constant 38 : index
    %51 = vector.load %arg2[%c0_60, %c0_61, %c38_62] : memref<1x16x512xbf16, #tpu.memory_space<vmem>>, vector<1x16x384xbf16>
    %52 = vector.shape_cast %51 : vector<1x16x384xbf16> to vector<16x384xbf16>
    %c272 = arith.constant 272 : index
    %c0_63 = arith.constant 0 : index
    %53 = vector.load %arg12[%c272, %c0_63] : memref<288x384xbf16, #tpu.memory_space<vmem>>, vector<16x384xbf16>
    tpu.vector_store %arg12[%c272, %c0_63], %52 {strides = array<i32>} : memref<288x384xbf16, #tpu.memory_space<vmem>>, vector<16x384xbf16>,
    %c0_64 = arith.constant 0 : index
    %c0_65 = arith.constant 0 : index
    %54 = vector.load %arg3[%c0_64, %c0_65] : memref<16x288xbf16, #tpu.memory_space<vmem>>, vector<16x288xbf16>
    %c0_66 = arith.constant 0 : index
    %c0_67 = arith.constant 0 : index
    %55 = vector.load %arg12[%c0_66, %c0_67] : memref<288x384xbf16, #tpu.memory_space<vmem>>, vector<288x384xbf16>
    %cst = arith.constant dense<0.000000e+00> : vector<16x384xf32>
    %56 = tpu.matmul %54, %55, %cst {dimension_numbers = #tpu.dot_dimension_numbers<[1], [0], [0], [1], [0, 0, 1, 1], [], []>} : vector<16x288xbf16>, vector<288x384xbf16>, vector<16x384xf32> -> vector<16x384xf32>
    %c0_68 = arith.constant 0 : index
    %c0_69 = arith.constant 0 : index
    %57 = vector.load %arg4[%c0_68, %c0_69] : memref<16x1xf32, #tpu.memory_space<vmem>>, vector<16x1xf32>
    %58 = vector.broadcast %57 : vector<16x1xf32> to vector<16x384xf32>
    %59 = arith.mulf %56, %58 : vector<16x384xf32>
    %c0_70 = arith.constant 0 : index
    %c0_71 = arith.constant 0 : index
    %60 = vector.load %arg5[%c0_70, %c0_71] : memref<16x1xf32, #tpu.memory_space<vmem>>, vector<16x1xf32>
    %61 = vector.broadcast %60 : vector<16x1xf32> to vector<16x384xf32>
    %62 = arith.addf %59, %61 : vector<16x384xf32>
    %cst_72 = arith.constant 0.000000e+00 : f32
    %63 = vector.broadcast %cst_72 : f32 to vector<16x384xf32>
    %64 = arith.maximumf %62, %63 : vector<16x384xf32>
    %c0_73 = arith.constant 0 : index
    %c0_74 = arith.constant 0 : index
    %65 = vector.load %arg6[%c0_73, %c0_74] : memref<384x1xf32, #tpu.memory_space<vmem>>, vector<384x1xf32>
    %cst_75 = arith.constant dense<0.000000e+00> : vector<16x1xf32>
    %66 = tpu.matmul %64, %65, %cst_75 {dimension_numbers = #tpu.dot_dimension_numbers<[1], [0], [0], [1], [0, 0, 1, 1], [], []>} : vector<16x384xf32>, vector<384x1xf32>, vector<16x1xf32> -> vector<16x1xf32>
    %cst_76 = arith.constant 3.906250e-03 : f32
    %67 = vector.broadcast %cst_76 : f32 to vector<16x1xf32>
    %68 = arith.mulf %66, %67 : vector<16x1xf32>
    %c0_77 = arith.constant 0 : index
    %c0_78 = arith.constant 0 : index
    %69 = vector.load %arg7[%c0_77, %c0_78] : memref<16x16xf32, #tpu.memory_space<vmem>>, vector<16x16xf32>
    %70 = vector.broadcast %68 : vector<16x1xf32> to vector<16x16xf32>
    %71 = arith.mulf %69, %70 : vector<16x16xf32>
    %cst_79 = arith.constant dense<0.000000e+00> : vector<16xf32>
    %72 = vector.multi_reduction <add>, %71, %cst_79 [0] : vector<16x16xf32> to vector<16xf32>
    %73 = vector.shape_cast %72 : vector<16xf32> to vector<1x16xf32>
    %c0_80 = arith.constant 0 : index
    %c0_81 = arith.constant 0 : index
    %74 = vector.load %arg8[%c0_80, %c0_81] : memref<1x16xf32, #tpu.memory_space<vmem>>, vector<1x16xf32>
    %75 = arith.addf %73, %74 : vector<1x16xf32>
    %cst_82 = arith.constant 0.000000e+00 : f32
    %76 = vector.broadcast %cst_82 : f32 to vector<1x16xf32>
    %77 = arith.maximumf %75, %76 : vector<1x16xf32>
    %c0_83 = arith.constant 0 : index
    %c0_84 = arith.constant 0 : index
    %78 = vector.load %arg9[%c0_83, %c0_84] : memref<16x16xf32, #tpu.memory_space<vmem>>, vector<16x16xf32>
    %79 = vector.broadcast %77 : vector<1x16xf32> to vector<16x16xf32>
    %80 = arith.mulf %78, %79 : vector<16x16xf32>
    %cst_85 = arith.constant dense<0.000000e+00> : vector<16xf32>
    %81 = vector.multi_reduction <add>, %80, %cst_85 [1] : vector<16x16xf32> to vector<16xf32>
    %82 = vector.shape_cast %81 : vector<16xf32> to vector<16x1xf32>
    %c0_86 = arith.constant 0 : index
    %c0_87 = arith.constant 0 : index
    %83 = vector.load %arg10[%c0_86, %c0_87] : memref<16x1xf32, #tpu.memory_space<vmem>>, vector<16x1xf32>
    %84 = arith.addf %82, %83 : vector<16x1xf32>
    %85 = arith.negf %84 : vector<16x1xf32>
    %86 = math.exp %85 : vector<16x1xf32>
    %cst_88 = arith.constant 1.000000e+00 : f32
    %87 = vector.broadcast %cst_88 : f32 to vector<16x1xf32>
    %88 = arith.addf %87, %86 : vector<16x1xf32>
    %89 = arith.divf %87, %88 : vector<16x1xf32>
    %90 = vector.extract_strided_slice %64 {offsets = [0, 0], sizes = [4, 384], strides = [1, 1]} : vector<16x384xf32> to vector<4x384xf32>
    %91 = vector.extract_strided_slice %89 {offsets = [0, 0], sizes = [4, 1], strides = [1, 1]} : vector<16x1xf32> to vector<4x1xf32>
    %cst_89 = arith.constant 1.000000e+00 : f32
    %92 = vector.broadcast %cst_89 : f32 to vector<4x1xf32>
    %93 = arith.addf %92, %91 : vector<4x1xf32>
    %94 = vector.broadcast %93 : vector<4x1xf32> to vector<4x384xf32>
    %95 = arith.mulf %90, %94 : vector<4x384xf32>
    %c0_90 = arith.constant 0 : index
    %c0_91 = arith.constant 0 : index
    %c0_92 = arith.constant 0 : index
    %96 = vector.load %arg11[%c0_90, %c0_91, %c0_92] : memref<1x4x384xf32, #tpu.memory_space<vmem>>, vector<1x4x384xf32>
    %97 = vector.shape_cast %96 : vector<1x4x384xf32> to vector<4x384xf32>
    %98 = vector.shape_cast %95 : vector<4x384xf32> to vector<1x4x384xf32>
    tpu.vector_store %arg11[%c0_90, %c0_91, %c0_92], %98 {strides = array<i32>} : memref<1x4x384xf32, #tpu.memory_space<vmem>>, vector<1x4x384xf32>,
    return
  }
  func.func @transform_0(%arg0: i32) -> (i32, i32, i32) {
    %c0_i32 = arith.constant 0 : i32
    %c0_i32_0 = arith.constant 0 : i32
    %c0_i32_1 = arith.constant 0 : i32
    return %arg0, %c0_i32, %c0_i32_0 : i32, i32, i32
  }
  func.func @transform_1(%arg0: i32) -> (i32, i32, i32) {
    %c0_i32 = arith.constant 0 : i32
    %c0_i32_0 = arith.constant 0 : i32
    %c0_i32_1 = arith.constant 0 : i32
    return %arg0, %c0_i32, %c0_i32_0 : i32, i32, i32
  }
  func.func @transform_2(%arg0: i32) -> (i32, i32) {
    %c0_i32 = arith.constant 0 : i32
    %c0_i32_0 = arith.constant 0 : i32
    %c0_i32_1 = arith.constant 0 : i32
    return %c0_i32, %c0_i32_0 : i32, i32
  }
  func.func @transform_3(%arg0: i32) -> (i32, i32) {
    %c0_i32 = arith.constant 0 : i32
    %c0_i32_0 = arith.constant 0 : i32
    %c0_i32_1 = arith.constant 0 : i32
    return %c0_i32, %c0_i32_0 : i32, i32
  }
  func.func @transform_4(%arg0: i32) -> (i32, i32) {
    %c0_i32 = arith.constant 0 : i32
    %c0_i32_0 = arith.constant 0 : i32
    %c0_i32_1 = arith.constant 0 : i32
    return %c0_i32, %c0_i32_0 : i32, i32
  }
  func.func @transform_5(%arg0: i32) -> (i32, i32) {
    %c0_i32 = arith.constant 0 : i32
    %c0_i32_0 = arith.constant 0 : i32
    %c0_i32_1 = arith.constant 0 : i32
    return %c0_i32, %c0_i32_0 : i32, i32
  }
  func.func @transform_6(%arg0: i32) -> (i32, i32) {
    %c0_i32 = arith.constant 0 : i32
    %c0_i32_0 = arith.constant 0 : i32
    %c0_i32_1 = arith.constant 0 : i32
    return %c0_i32, %c0_i32_0 : i32, i32
  }
  func.func @transform_7(%arg0: i32) -> (i32, i32) {
    %c0_i32 = arith.constant 0 : i32
    %c0_i32_0 = arith.constant 0 : i32
    %c0_i32_1 = arith.constant 0 : i32
    return %c0_i32, %c0_i32_0 : i32, i32
  }
  func.func @transform_8(%arg0: i32) -> (i32, i32) {
    %c0_i32 = arith.constant 0 : i32
    %c0_i32_0 = arith.constant 0 : i32
    %c0_i32_1 = arith.constant 0 : i32
    return %c0_i32, %c0_i32_0 : i32, i32
  }
  func.func @transform_9(%arg0: i32) -> (i32, i32) {
    %c0_i32 = arith.constant 0 : i32
    %c0_i32_0 = arith.constant 0 : i32
    %c0_i32_1 = arith.constant 0 : i32
    return %c0_i32, %c0_i32_0 : i32, i32
  }
  func.func @transform_10(%arg0: i32) -> (i32, i32, i32) {
    %c0_i32 = arith.constant 0 : i32
    %c0_i32_0 = arith.constant 0 : i32
    %c0_i32_1 = arith.constant 0 : i32
    return %arg0, %c0_i32, %c0_i32_0 : i32, i32, i32
  }
}

</mosaic_0001>

<bundles_post_ra>
// kernel: tpu_custom_call.1
= control target key start
LH: loop header
LB: loop body
LE: loop exit
PB: predicated region body
PF: predicated region fallthrough
CT: control target
= control target key end

     0   :  { %15 = vsyncpa [#allocation4], 0  ;;  %s2652_s0 = inlined_call_operand.vmem [shape: bf16[2,16,512], index: 0, kind: input, shape index: {}]   ;;  %s2653_s1 = inlined_call_operand.vmem [shape: bf16[2,16,512], index: 1, kind: input, shape index: {}]   ;;  %s2654_s2 = inlined_call_operand.vmem [shape: bf16[16,288], index: 2, kind: input, shape index: {}]   ;;  %s2655_s3 = inlined_call_operand.vmem [shape: f32[16,1], index: 3, kind: input, shape index: {}]   ;;  %s2656_s4 = inlined_call_operand.vmem [shape: f32[16,1], index: 4, kind: input, shape index: {}]   ;;  %s2657_s5 = inlined_call_operand.vmem [shape: f32[384,1], index: 5, kind: input, shape index: {}]   ;;  %s2658_s6 = inlined_call_operand.vmem [shape: f32[16,16], index: 6, kind: input, shape index: {}]   ;;  %s2659_s7 = inlined_call_operand.vmem [shape: f32[1,16], index: 7, kind: input, shape index: {}]   ;;  %s2660_s8 = inlined_call_operand.vmem [shape: f32[16,16], index: 8, kind: input, shape index: {}]   ;;  %s2661_s9 = inlined_call_operand.vmem [shape: f32[16,1], index: 9, kind: input, shape index: {}]   ;;  %s2662_s10 = inlined_call_operand.hbm [shape: f32[2,4,384], index: 10, kind: output, shape index: {}]  }
   0x1   :  { %17 = vsyncpa [#allocation4 + $0x1], 0  ;;  %s2145_s13 = smov 0   ;;  %s2147_s14 = smov 0  }
   0x2   :  { %s2149_s15 = smov 0   ;;  %s2151_s16 = smov 0  }
   0x3 LB: > { %s2166_s17 = sadd.s32 4294967295, %s2076_s16   ;;  %s1657_s18 = sadd.s32 4294967294, %s2076_s16   ;;  %s2076_s16 = sphi %s2151_s16, %s2668_s16   ;;  %s2072_s15 = sphi %s2149_s15, %s2667_s15   ;;  %s2068_s14 = sphi %s2147_s14, %s2666_s14   ;;  %s2064_s13 = sphi %s2145_s13, %s2665_s13  }
   0x4   : > { %s2170_s19 = sadd.s32 1, %s2076_s16   ;;  %s250_s20 = sadd.s32 1, %s2072_s15 }
   0x5   : > { %s247_s21 = ssub.s32 %s2076_s16, %s2170_s19  ;;  %p260_p0 = scmp.ne.s32.totalorder %s2072_s15, %s2068_s14 }
   0x6   : > { %p248_p1 = scmp.eq.s32.totalorder %s247_s21, 0  ;;  %p261_p2 = scmp.eq.s32.totalorder %s2166_s17, 1 }
   0x7   : > { %p266_p3 = scmp.ne.s32.totalorder %s2068_s14, %s2064_s13  ;;  %p267_p4 = scmp.eq.s32.totalorder %s1657_s18, 1 }
   0x8   : > { %s2181_s22 = scalar_select %p248_p1, %s2072_s15, %s250_s20  }
   0x9   : > { %p2183_p5 = por %p261_p2, %p260_p0  ;;  %p2187_p6 = por %p267_p4, %p266_p3 }
   0xa   : > { %p1660_p7 = scmp.ge.s32.totalorder %s2076_s16, 1  ;;  %p325_p8 = scmp.lt.s32.totalorder %s2076_s16, 3 }
   0xc   : > { %p326_p9 = pnand %p1660_p7, %p325_p8 }
   0xd   : > { %p368_p10 = scmp.lt.s32.totalorder (!%p326_p9), %s2166_s17, 1  ;;  %s2078_s18 = smov (!%p326_p9), 127   ;;  %v2082_v6 = vmov (!%p326_p9), 0   ;;  %v2303_v9 = vld [vmem:[%s2654_s2 + $0x4] ss:$12 sps:$4 sm:$0xff] (!%p326_p9)   ;;  %vm453_vm0 = vcmask (!%p326_p9), 1039360  }
   0xe   : > { %329 = sbr.rel (%p326_p9) target bundleno = 1184 (0x4a0), region = 60  ;;  %s2079_s20 = smov (!%p326_p9), 126   ;;  %1177 = vmatprep.mubr.bf16.mxu1 (!%p326_p9), %v2082_v6  ;;  %1991 = vset.pattern.permute.xlu1 (!%p326_p9), %v2082_v6  ;;  %vm528_vm1 = vcmask (!%p326_p9), 1031168   ;;  %v1270_v20 = vld [vmem:[%s2655_s3] sm:$0xff] (!%p326_p9)  ;;  %v1289_v25 = vld [vmem:[%s2656_s4 + $0x8] sm:$0xff] (!%p326_p9)  ;;  %vm978_vm2 = vcmask (!%p326_p9), 736256  }
   0xf   : > { %s2080_s21 = smov (!%p326_p9), 90   ;;  %1990 = vset.pattern.permute.xlu0 (!%p326_p9), %v2082_v6  ;;  %s2084_s27 = smov (!%p326_p9), 108   ;;  %1134 = vmatprep.mubr.bf16.mxu0 (!%p326_p9), %v2303_v9  ;;  %v1288_v22 = vld [vmem:[%s2656_s4] sm:$0xff] (!%p326_p9)  ;;  %v1271_v27 = vld [vmem:[%s2655_s3 + $0x8] sm:$0xff] (!%p326_p9)  ;;  %vm603_vm3 = vcmask (!%p326_p9), 900096   ;;  %vm1098_vm4 = vcmask (!%p326_p9), 261120  }
  0x10   : > { %s2085_s28 = smov (!%p326_p9), 92   ;;  %s2086_s30 = smov (!%p326_p9), 91   ;;  %v2365_v50 = vld [vmem:[%s2654_s2 + $0x8] ss:$12 sps:$4 sm:$0xff] (!%p326_p9)   ;;  %vm678_vm5 = vcmask (!%p326_p9), 891904   ;;  %vm753_vm6 = vcmask (!%p326_p9), 883712  }
  0x11   : > { %vm828_vm7 = vcmask (!%p326_p9), 752640   ;;  %vm903_vm8 = vcmask (!%p326_p9), 744448   ;;  %vm2088_vm9 = vmmov (!%p326_p9), 0   ;;  %vm1526_vm10 = vcmask (!%p326_p9), 130048  }
  0x15   : > { %s369_s25 = scalar_select %p368_p10, %s2166_s17, 1 }
  0x17   : > { %s1744_s26 = sshll.u32 %s369_s25, 5  ;;  %s2081_s25 = smov 110  }
  0x18   : > { %s2198_s29 = scalar_lea.vmem %s2652_s0, %s1744_s26  ;;  %s2203_s12 = scalar_lea.vmem %s2653_s1, %s1744_s26 }
  0x19   : > { %v2206_v0 = vld [vmem:[%s2198_s29 + $0x4] ss:$16 sps:$4 sm:$0xff]   ;;  %v2209_v1 = vld [vmem:[%s2198_s29] ss:$16 sps:$4 sm:$0xff]   ;;  %v2214_v2 = vld [vmem:[%s2198_s29 + $0x8] ss:$16 sps:$4 sm:$0xff]  }
  0x1a   : > { %447 = vrot.lane.b32.xlu0 %v2206_v0, %s2078_s18  ;;  %1102 = vmatprep.subr.bf16.mxu0 %v2206_v0  ;;  %v2220_v3 = vld [vmem:[%s2203_s12 + $0x4] ss:$16 sps:$4 sm:$0xff]   ;;  %v2224_v4 = vld [vmem:[%s2203_s12] ss:$16 sps:$4 sm:$0xff]   ;;  %v2230_v5 = vld [vmem:[%s2203_s12 + $0x8] ss:$16 sps:$4 sm:$0xff]  }
  0x1b   : > { %445 = vrot.lane.b32.xlu1 %v2209_v1, %s2078_s18  ;;  %1103 = vmatpush1.bf16.msra.mxu0 %v2209_v1  ;;  %v2002_v7 = vld [vmem:[%s2198_s29 + $0xc] ss:$16 sps:$4 sm:$0xff]   ;;  %s2083_s26 = smov 109   ;;  %v2005_v56 = vld [vmem:[%s2198_s29 + $0x8] ss:$16 sps:$4 sm:$0xff]   ;;  %s1939_s29 = smul.u32 192, %s2166_s17 }
  0x1c   : > { %1104 = vmatprep.subr.bf16.mxu0 %v2220_v3  ;;  %v2003_v8 = vld [vmem:[%s2203_s12 + $0xc] ss:$16 sps:$4 sm:$0xff]  }
  0x1e   : > { %449 = vrot.lane.b32.xlu0 %v2214_v2, %s2078_s18 }
  0x1f   : > { %485 = vrot.lane.b32.xlu1 %v2220_v3, %s2078_s18  ;;  %1105 = vmatpush1.bf16.msra.mxu0 %v2224_v4 }
  0x22   : > { %487 = vrot.lane.b32.xlu0 %v2230_v5, %s2078_s18 }
  0x23   : > { %483 = vrot.lane.b32.xlu1 %v2224_v4, %s2078_s18 }
  0x26   : > { %522 = vrot.lane.b32.xlu0 %v2206_v0, %s2079_s20 }
  0x27   : > { %524 = vrot.lane.b32.xlu1 %v2214_v2, %s2079_s20 }
  0x2a   : > { %520 = vrot.lane.b32.xlu0 %v2209_v1, %s2079_s20 }
  0x2b   : > { %560 = vrot.lane.b32.xlu1 %v2220_v3, %s2079_s20 }
  0x2e   : > { %562 = vrot.lane.b32.xlu0 %v2230_v5, %s2079_s20 }
  0x2f   : > { %558 = vrot.lane.b32.xlu1 %v2224_v4, %s2079_s20 }
  0x32   : > { %972 = vrot.lane.b32.xlu0 %v2206_v0, %s2080_s21 }
  0x33   : > { %974 = vrot.lane.b32.xlu1 %v2214_v2, %s2080_s21 }
  0x36   : > { %970 = vrot.lane.b32.xlu0 %v2209_v1, %s2080_s21 }
  0x37   : > { %597 = vrot.lane.b32.xlu1 %v2206_v0, %s2081_s25 }
  0x3a   : > { %599 = vrot.lane.b32.xlu0 %v2214_v2, %s2081_s25 }
  0x3b   : > { %595 = vrot.lane.b32.xlu1 %v2209_v1, %s2081_s25 }
  0x3e   : > { %1010 = vrot.lane.b32.xlu0 %v2220_v3, %s2080_s21 }
  0x3f   : > { %1012 = vrot.lane.b32.xlu1 %v2230_v5, %s2080_s21 }
  0x42   : > { %1008 = vrot.lane.b32.xlu0 %v2224_v4, %s2080_s21 }
  0x43   : > { %635 = vrot.lane.b32.xlu1 %v2220_v3, %s2081_s25 }
  0x46   : > { %637 = vrot.lane.b32.xlu0 %v2230_v5, %s2081_s25 }
  0x47   : > { %633 = vrot.lane.b32.xlu1 %v2224_v4, %s2081_s25 }
  0x4a   : > { %674 = vrot.lane.b32.xlu0 %v2214_v2, %s2083_s26 }
  0x4b   : > { %676 = vrot.lane.b32.xlu1 %v2002_v7, %s2083_s26 }
  0x4e   : > { %672 = vrot.lane.b32.xlu0 %v2206_v0, %s2083_s26 }
  0x4f   : > { %670 = vrot.lane.b32.xlu1 %v2209_v1, %s2083_s26 }
  0x52   : > { %712 = vrot.lane.b32.xlu0 %v2230_v5, %s2083_s26 }
  0x53   : > { %714 = vrot.lane.b32.xlu1 %v2003_v8, %s2083_s26 }
  0x56   : > { %710 = vrot.lane.b32.xlu0 %v2220_v3, %s2083_s26 }
  0x57   : > { %708 = vrot.lane.b32.xlu1 %v2224_v4, %s2083_s26 }
  0x5a   : > { %749 = vrot.lane.b32.xlu0 %v2214_v2, %s2084_s27 }
  0x5b   : > { %751 = vrot.lane.b32.xlu1 %v2002_v7, %s2084_s27 }
  0x5e   : > { %451 = vrot.lane.b32.xlu0 %v2002_v7, %s2078_s18 }
  0x5f   : > { %747 = vrot.lane.b32.xlu1 %v2206_v0, %s2084_s27 }
  0x62   : > { %745 = vrot.lane.b32.xlu0 %v2209_v1, %s2084_s27 }
  0x63   : > { %787 = vrot.lane.b32.xlu1 %v2230_v5, %s2084_s27 }
  0x66   : > { %789 = vrot.lane.b32.xlu0 %v2003_v8, %s2084_s27 }
  0x67   : > { %489 = vrot.lane.b32.xlu1 %v2003_v8, %s2078_s18  ;;  %s365_s18 = sand.u32 1, %s2068_s14  }
  0x68   : > { %s1572_s17 = scalar_lea.sflag [#allocation4], %s365_s18 }
  0x6a   : > { %785 = vrot.lane.b32.xlu0 %v2220_v3, %s2084_s27 }
  0x6b   : > { %783 = vrot.lane.b32.xlu1 %v2224_v4, %s2084_s27 }
  0x6e   : > { %824 = vrot.lane.b32.xlu0 %v2214_v2, %s2085_s28 }
  0x6f   : > { %826 = vrot.lane.b32.xlu1 %v2002_v7, %s2085_s28 }
  0x72   : > { %526 = vrot.lane.b32.xlu0 %v2002_v7, %s2079_s20 }
  0x73   : > { %822 = vrot.lane.b32.xlu1 %v2206_v0, %s2085_s28 }
  0x76   : > { %820 = vrot.lane.b32.xlu0 %v2209_v1, %s2085_s28 }
  0x77   : > { %862 = vrot.lane.b32.xlu1 %v2230_v5, %s2085_s28 }
  0x7a   : > { %864 = vrot.lane.b32.xlu0 %v2003_v8, %s2085_s28 }
  0x7b   : > { %564 = vrot.lane.b32.xlu1 %v2003_v8, %s2079_s20  ;;  %s1938_s20 = smul.u32 12, %s365_s18 }
  0x7e   : > { %860 = vrot.lane.b32.xlu0 %v2220_v3, %s2085_s28 }
  0x7f   : > { %858 = vrot.lane.b32.xlu1 %v2224_v4, %s2085_s28 }
  0x82   : > { %899 = vrot.lane.b32.xlu0 %v2214_v2, %s2086_s30 }
  0x83   : > { %901 = vrot.lane.b32.xlu1 %v2002_v7, %s2086_s30 }
  0x86   : > { %601 = vrot.lane.b32.xlu0 %v2002_v7, %s2081_s25 }
  0x87   : > { %897 = vrot.lane.b32.xlu1 %v2206_v0, %s2086_s30  ;;  %v2006_v0 = vld [vmem:[%s2203_s12 + $0x8] ss:$16 sps:$4 sm:$0xff]   ;;  %s367_s12 = scalar_lea.vmem [#allocation3], %s1938_s20 }
  0x8a   : > { %895 = vrot.lane.b32.xlu0 %v2209_v1, %s2086_s30 }
  0x8b   : > { %937 = vrot.lane.b32.xlu1 %v2230_v5, %s2086_s30 }
  0x8c   : > { %v448_v10 = vpop.permute.xlu0 %447 }
  0x8d   : > { %v446_v11 = vpop.permute.xlu1 %445 }
  0x8e   : > { %939 = vrot.lane.b32.xlu0 %v2003_v8, %s2086_s30  ;;  %v454_v15 = vsel %vm453_vm0, %v446_v11, %v448_v10 }
  0x8f   : > { %639 = vrot.lane.b32.xlu1 %v2003_v8, %s2081_s25  ;;  %s1586_s25 = sshll.u32 %s367_s12, 4  ;;  %s2612_s25 = int_to_ptr.vmem [resolvable:$true] %s1586_s25 }
  0x90   : > { %v2311_v12 = vpop.permute.xlu0 %449  ;;  %s2014_s28 = scalar_lea.vmem %s2612_s25, 192 }
  0x91   : > { %v486_v13 = vpop.permute.xlu1 %485  ;;  %v455_v14 = vsel %vm453_vm0, %v448_v10, %v2311_v12  ;;  %p2015_p11 = scmp.ne.s32.totalorder %s2612_s25, %s2014_s28 }
  0x92   : > { %935 = vrot.lane.b32.xlu0 %v2220_v3, %s2086_s30  ;;  %1106 = vmatprep.subr.bf16.mxu0 %v455_v14 }
  0x93   : > { %933 = vrot.lane.b32.xlu1 %v2224_v4, %s2086_s30  ;;  %1107 = vmatpush1.bf16.msra.mxu0 %v454_v15  ;;  %p2016_p12 = pnand %p2015_p11, %p2183_p5  ;;  %s2089_s30 = smov [#allocation3]  }
  0x94   : > { %v2318_v16 = vpop.permute.xlu0 %487  ;;  %s2018_s11 = sshll.u32 %s2089_s30, 4  ;;  %s2019_s11 = int_to_ptr.vmem [resolvable:$false] %s2018_s11 }
  0x95   : > { %v484_v17 = vpop.permute.xlu1 %483  ;;  %v492_v18 = vsel %vm453_vm0, %v486_v13, %v2318_v16  ;;  %p2017_p13 = pneg %p2016_p12  ;;  %s2020_s20 = scalar_lea.vmem %s2019_s11, 384 }
  0x96   : > { %976 = vrot.lane.b32.xlu0 %v2002_v7, %s2080_s21  ;;  %1108 = vmatprep.subr.bf16.mxu0 %v492_v18  ;;  %v491_v19 = vsel %vm453_vm0, %v484_v17, %v486_v13  ;;  %p2021_p0 = scmp.lt.s32.totalorder %s2612_s25, %s2019_s11  ;;  %p2022_p1 = scmp.lt.s32.totalorder %s2020_s20, %s2014_s28 }
  0x97   : > { %1014 = vrot.lane.b32.xlu1 %v2003_v8, %s2080_s21  ;;  %1109 = vmatpush1.bf16.msra.mxu0 %v491_v19  ;;  %s2610_s21 = scalar_lea.hbm %s2662_s10, %s1939_s29 }
  0x98   : > { %v523_v21 = vpop.permute.xlu0 %522  ;;  %p2023_p2 = por %p2022_p1, %p2021_p0 }
  0x99   : > { %v2331_v23 = vpop.permute.xlu1 %524 }
  0x9a   : > { %v530_v24 = vsel %vm528_vm1, %v523_v21, %v2331_v23  ;;  %1274 = vperm.xlu0 %1990, %v1270_v20   ;;  %p2024_p3 = pnand %p2023_p2, %p2017_p13 }
  0x9b   : > { %1110 = vmatprep.subr.bf16.mxu0 %v530_v24  ;;  %1292 = vperm.xlu1 %1991, %v1288_v22  }
  0x9c   : > { %v521_v26 = vpop.permute.xlu0 %520 }
  0x9d   : > { %v561_v28 = vpop.permute.xlu1 %560  ;;  %v529_v29 = vsel %vm528_vm1, %v521_v26, %v523_v21 }
  0x9e   : > { %1111 = vmatpush1.bf16.msra.mxu0 %v529_v29  ;;  %1297 = vperm.xlu0 %1990, %v1289_v25  }
  0x9f   : > { %1279 = vperm.xlu1 %1991, %v1271_v27  }
  0xa0   : > { %v2342_v30 = vpop.permute.xlu0 %562 }
  0xa1   : > { %v559_v31 = vpop.permute.xlu1 %558  ;;  %v567_v32 = vsel %vm528_vm1, %v561_v28, %v2342_v30 }
  0xa2   : > { %1112 = vmatprep.subr.bf16.mxu0 %v567_v32  ;;  %v566_v33 = vsel %vm528_vm1, %v559_v31, %v561_v28 }
  0xa3   : > { %1113 = vmatpush1.bf16.msra.mxu0 %v566_v33 }
  0xa4   : > { %v973_v34 = vpop.permute.xlu0 %972 }
  0xa5   : > { %v2347_v35 = vpop.permute.xlu1 %974 }
  0xa6   : > { %v980_v36 = vsel %vm978_vm2, %v973_v34, %v2347_v35 }
  0xa7   : > { %1145 = vmatprep.subr.bf16.mxu1 %v980_v36 }
  0xa8   : > { %v971_v37 = vpop.permute.xlu0 %970 }
  0xa9   : > { %v598_v38 = vpop.permute.xlu1 %597  ;;  %v979_v39 = vsel %vm978_vm2, %v971_v37, %v973_v34 }
  0xaa   : > { %1146 = vmatpush1.bf16.msra.mxu1 %v979_v39 }
  0xac   : > { %v2352_v40 = vpop.permute.xlu0 %599 }
  0xad   : > { %v596_v41 = vpop.permute.xlu1 %595  ;;  %v605_v42 = vsel %vm603_vm3, %v598_v38, %v2352_v40 }
  0xae   : > { %1114 = vmatprep.subr.bf16.mxu0 %v605_v42  ;;  %v604_v43 = vsel %vm603_vm3, %v596_v41, %v598_v38 }
  0xaf   : > { %1115 = vmatpush1.bf16.msra.mxu0 %v604_v43 }
  0xb0   : > { %v1011_v44 = vpop.permute.xlu0 %1010 }
  0xb1   : > { %v2357_v45 = vpop.permute.xlu1 %1012 }
  0xb2   : > { %v1017_v46 = vsel %vm978_vm2, %v1011_v44, %v2357_v45 }
  0xb3   : > { %1147 = vmatprep.subr.bf16.mxu1 %v1017_v46 }
  0xb4   : > { %v1009_v47 = vpop.permute.xlu0 %1008 }
  0xb5   : > { %v636_v48 = vpop.permute.xlu1 %635  ;;  %v1016_v49 = vsel %vm978_vm2, %v1009_v47, %v1011_v44 }
  0xb6   : > { %1148 = vmatpush1.bf16.msra.mxu1 %v1016_v49 }
  0xb8   : > { %v2367_v51 = vpop.permute.xlu0 %637 }
  0xb9   : > { %v634_v52 = vpop.permute.xlu1 %633  ;;  %v642_v53 = vsel %vm603_vm3, %v636_v48, %v2367_v51  ;;  %1738 = vmatmul.mubr.msk.bf16.vlgmr.msra.gmra.mrb[0].mxu1 %vm1098_vm4, %v2365_v50 }
  0xba   : > { %1116 = vmatprep.subr.bf16.mxu0 %v642_v53  ;;  %v641_v54 = vsel %vm603_vm3, %v634_v52, %v636_v48  ;;  %1220 = vmatprep.mubr.bf16.mxu1 %v2303_v9 }
  0xbb   : > { %1117 = vmatpush1.bf16.msra.mxu0 %v641_v54 }
  0xbc   : > { %v675_v55 = vpop.permute.xlu0 %674 }
  0xbd   : > { %v677_v57 = vpop.permute.xlu1 %676 }
  0xbe   : > { %v681_v58 = vsel %vm678_vm5, %v675_v55, %v677_v57 }
  0xbf   : > { %1746 = vmatprep.subr.bf16.mxu1 %v681_v58 }
  0xc0   : > { %v673_v59 = vpop.permute.xlu0 %672  ;;  %1747 = vmatpush3.bf16.msra.mxu1 %v2005_v56 }
  0xc1   : > { %v671_v60 = vpop.permute.xlu1 %670  ;;  %v680_v61 = vsel %vm678_vm5, %v673_v59, %v675_v55 }
  0xc2   : > { %1118 = vmatprep.subr.bf16.mxu0 %v680_v61  ;;  %v679_v62 = vsel %vm678_vm5, %v671_v60, %v673_v59 }
  0xc3   : > { %1119 = vmatpush1.bf16.msra.mxu0 %v679_v62 }
  0xc4   : > { %v713_v63 = vpop.permute.xlu0 %712 }
  0xc5   : > { %v715_v1 = vpop.permute.xlu1 %714 }
  0xc6   : > { %v718_v2 = vsel %vm678_vm5, %v713_v63, %v715_v1 }
  0xc7   : > { %1748 = vmatprep.subr.bf16.mxu1 %v718_v2 }
  0xc8   : > { %v711_v3 = vpop.permute.xlu0 %710  ;;  %1749 = vmatpush3.bf16.msra.mxu1 %v2006_v0 }
  0xc9   : > { %v709_v4 = vpop.permute.xlu1 %708  ;;  %v717_v5 = vsel %vm678_vm5, %v711_v3, %v713_v63  ;;  %v2087_v63 = vmov 0.0  }
  0xca   : > { %1120 = vmatprep.subr.bf16.mxu0 %v717_v5  ;;  %v716_v6 = vsel %vm678_vm5, %v709_v4, %v711_v3 }
  0xcb   : > { %1121 = vmatpush1.bf16.msra.mxu0 %v716_v6  ;;  %v1328_v6 = vld [vmem:[%s2657_s5 + $0x80] sm:$0xff] }
  0xcc   : > { %v750_v7 = vpop.permute.xlu0 %749 }
  0xcd   : > { %v752_v8 = vpop.permute.xlu1 %751 }
  0xce   : > { %v756_v9 = vsel %vm753_vm6, %v750_v7, %v752_v8 }
  0xcf   : > { %1750 = vmatprep.subr.bf16.mxu1 %v756_v9  ;;  %v1313_v9 = vld [vmem:[%s2657_s5 + $0x8] sm:$0xff] }
  0xd0   : > { %v452_v10 = vpop.permute.xlu0 %451 }
  0xd1   : > { %v456_v11 = vsel %vm453_vm0, %v2311_v12, %v452_v10  ;;  %v748_v13 = vpop.permute.xlu1 %747  ;;  %v1331_v10 = vld [vmem:[%s2657_s5 + $0x98] sm:$0xff] }
  0xd2   : > { %v755_v14 = vsel %vm753_vm6, %v748_v13, %v750_v7  ;;  %1751 = vmatpush3.bf16.msra.mxu1 %v456_v11  ;;  %v1329_v7 = vld [vmem:[%s2657_s5 + $0x88] sm:$0xff] }
  0xd3   : > { %1122 = vmatprep.subr.bf16.mxu0 %v755_v14  ;;  %v1870_v8 = vpack.c.bf16 %v1329_v7, %v1328_v6  ;;  %v1314_v14 = vld [vmem:[%s2657_s5 + $0x10] sm:$0xff]  ;;  %v1327_v6 = vld [vmem:[%s2657_s5 + $0x78] sm:$0xff] }
  0xd4   : > { %v746_v15 = vpop.permute.xlu0 %745 }
  0xd5   : > { %v788_v17 = vpop.permute.xlu1 %787  ;;  %v754_v18 = vsel %vm753_vm6, %v746_v15, %v748_v13  ;;  %v1315_v15 = vld [vmem:[%s2657_s5 + $0x18] sm:$0xff] }
  0xd6   : > { %1123 = vmatpush1.bf16.msra.mxu0 %v754_v18  ;;  %v1345_v18 = vld [vmem:[%s2657_s5 + $0x108] sm:$0xff] }
  0xd8   : > { %v790_v19 = vpop.permute.xlu0 %789 }
  0xd9   : > { %v490_v20 = vpop.permute.xlu1 %489  ;;  %v793_v21 = vsel %vm753_vm6, %v788_v17, %v790_v19  ;;  %v1333_v19 = vld [vmem:[%s2657_s5 + $0xa8] sm:$0xff] }
  0xda   : > { %v493_v22 = vsel %vm453_vm0, %v2318_v16, %v490_v20  ;;  %1752 = vmatprep.subr.bf16.mxu1 %v793_v21  ;;  %v1876_v20 = vpack.c.bf16 %v1315_v15, %v1314_v14 }
  0xdb   : > { %1753 = vmatpush3.bf16.msra.mxu1 %v493_v22  ;;  %v1346_v22 = vld [vmem:[%s2657_s5 + $0x110] sm:$0xff] }
  0xdc   : > { %v786_v12 = vpop.permute.xlu0 %785 }
  0xdd   : > { %v784_v24 = vpop.permute.xlu1 %783  ;;  %v792_v25 = vsel %vm753_vm6, %v786_v12, %v788_v17  ;;  %v1344_v17 = vld [vmem:[%s2657_s5 + $0x100] sm:$0xff] }
  0xde   : > { %1124 = vmatprep.subr.bf16.mxu0 %v792_v25  ;;  %v791_v26 = vsel %vm753_vm6, %v784_v24, %v786_v12  ;;  %v1902_v21 = vpack.c.bf16 %v1345_v18, %v1344_v17  ;;  %v1316_v24 = vld [vmem:[%s2657_s5 + $0x20] sm:$0xff]  ;;  %v1317_v25 = vld [vmem:[%s2657_s5 + $0x28] sm:$0xff] }
  0xdf   : > { %1125 = vmatpush1.bf16.msra.mxu0 %v791_v26  ;;  %v1347_v26 = vld [vmem:[%s2657_s5 + $0x118] sm:$0xff] }
  0xe0   : > { %v825_v27 = vpop.permute.xlu0 %824 }
  0xe1   : > { %v827_v28 = vpop.permute.xlu1 %826 }
  0xe2   : > { %v831_v29 = vsel %vm828_vm7, %v825_v27, %v827_v28  ;;  %v1334_v28 = vld [vmem:[%s2657_s5 + $0xb0] sm:$0xff] }
  0xe3   : > { %1754 = vmatprep.subr.bf16.mxu1 %v831_v29  ;;  %v1335_v29 = vld [vmem:[%s2657_s5 + $0xb8] sm:$0xff] }
  0xe4   : > { %v527_v31 = vpop.permute.xlu0 %526 }
  0xe5   : > { %v531_v16 = vsel %vm528_vm1, %v2331_v23, %v527_v31  ;;  %v823_v32 = vpop.permute.xlu1 %822  ;;  %v1348_v31 = vld [vmem:[%s2657_s5 + $0x120] sm:$0xff] }
  0xe6   : > { %v830_v33 = vsel %vm828_vm7, %v823_v32, %v825_v27  ;;  %1755 = vmatpush3.bf16.msra.mxu1 %v531_v16  ;;  %v1906_v27 = vpack.c.bf16 %v1347_v26, %v1346_v22  ;;  %v1349_v16 = vld [vmem:[%s2657_s5 + $0x128] sm:$0xff] }
  0xe7   : > { %1126 = vmatprep.subr.bf16.mxu0 %v830_v33  ;;  %v1910_v33 = vpack.c.bf16 %v1349_v16, %v1348_v31 }
  0xe8   : > { %v821_v34 = vpop.permute.xlu0 %820 }
  0xe9   : > { %v863_v36 = vpop.permute.xlu1 %862  ;;  %v829_v37 = vsel %vm828_vm7, %v821_v34, %v823_v32  ;;  %v1880_v32 = vpack.c.bf16 %v1317_v25, %v1316_v24  ;;  %v1882_v34 = vpack.c.bf16 %v1335_v29, %v1334_v28 }
  0xea   : > { %1127 = vmatpush1.bf16.msra.mxu0 %v829_v37  ;;  %v1319_v37 = vld [vmem:[%s2657_s5 + $0x38] sm:$0xff] }
  0xec   : > { %v865_v38 = vpop.permute.xlu0 %864 }
  0xed   : > { %v565_v39 = vpop.permute.xlu1 %564  ;;  %v868_v41 = vsel %vm828_vm7, %v863_v36, %v865_v38  ;;  %v1336_v38 = vld [vmem:[%s2657_s5 + $0xc0] sm:$0xff] }
  0xee   : > { %v568_v42 = vsel %vm528_vm1, %v2342_v30, %v565_v39  ;;  %1756 = vmatprep.subr.bf16.mxu1 %v868_v41  ;;  %v1337_v39 = vld [vmem:[%s2657_s5 + $0xc8] sm:$0xff] }
  0xef   : > { %1757 = vmatpush3.bf16.msra.mxu1 %v568_v42  ;;  %v1886_v42 = vpack.c.bf16 %v1337_v39, %v1336_v38 }
  0xf0   : > { %v861_v23 = vpop.permute.xlu0 %860 }
  0xf1   : > { %v859_v43 = vpop.permute.xlu1 %858  ;;  %v867_v44 = vsel %vm828_vm7, %v861_v23, %v863_v36  ;;  %v1318_v36 = vld [vmem:[%s2657_s5 + $0x30] sm:$0xff] }
  0xf2   : > { %1128 = vmatprep.subr.bf16.mxu0 %v867_v44  ;;  %v866_v46 = vsel %vm828_vm7, %v859_v43, %v861_v23  ;;  %v1884_v41 = vpack.c.bf16 %v1319_v37, %v1318_v36  ;;  %v1320_v23 = vld [vmem:[%s2657_s5 + $0x40] sm:$0xff]  ;;  %v1321_v43 = vld [vmem:[%s2657_s5 + $0x48] sm:$0xff] }
  0xf3   : > { %1129 = vmatpush1.bf16.msra.mxu0 %v866_v46  ;;  %v1888_v44 = vpack.c.bf16 %v1321_v43, %v1320_v23  ;;  %v1350_v46 = vld [vmem:[%s2657_s5 + $0x130] sm:$0xff] }
  0xf4   : > { %v900_v47 = vpop.permute.xlu0 %899 }
  0xf5   : > { %v902_v48 = vpop.permute.xlu1 %901 }
  0xf6   : > { %v906_v49 = vsel %vm903_vm8, %v900_v47, %v902_v48 }
  0xf7   : > { %1758 = vmatprep.subr.bf16.mxu1 %v906_v49  ;;  %v1338_v49 = vld [vmem:[%s2657_s5 + $0xd0] sm:$0xff] }
  0xf8   : > { %v602_v52 = vpop.permute.xlu0 %601 }
  0xf9   : > { %v606_v30 = vsel %vm603_vm3, %v2352_v40, %v602_v52  ;;  %v898_v53 = vpop.permute.xlu1 %897  ;;  %v2007_v40 = vld [vmem:[%s2654_s2] ss:$12 sps:$4 sm:$0xff]   ;;  %v1339_v52 = vld [vmem:[%s2657_s5 + $0xd8] sm:$0xff] }
  0xfa   : > { %v905_v54 = vsel %vm903_vm8, %v898_v53, %v900_v47  ;;  %1759 = vmatpush3.bf16.msra.mxu1 %v606_v30  ;;  %v1351_v47 = vld [vmem:[%s2657_s5 + $0x138] sm:$0xff]  ;;  %v1890_v30 = vpack.c.bf16 %v1339_v52, %v1338_v49 }
  0xfb   : > { %1130 = vmatprep.subr.bf16.mxu0 %v905_v54  ;;  %v1914_v48 = vpack.c.bf16 %v1351_v47, %v1350_v46  ;;  %v1323_v54 = vld [vmem:[%s2657_s5 + $0x58] sm:$0xff] }
  0xfc   : > { %v896_v55 = vpop.permute.xlu0 %895 }
  0xfd   : > { %v938_v56 = vpop.permute.xlu1 %937  ;;  %v904_v57 = vsel %vm903_vm8, %v896_v55, %v898_v53  ;;  %v1322_v53 = vld [vmem:[%s2657_s5 + $0x50] sm:$0xff] }
  0xfe   : > { %1131 = vmatpush1.bf16.msra.mxu0 %v904_v57  ;;  %v1892_v55 = vpack.c.bf16 %v1323_v54, %v1322_v53  ;;  %v1353_v57 = vld [vmem:[%s2657_s5 + $0x148] sm:$0xff] }
 0x100   : > { %v940_v58 = vpop.permute.xlu0 %939 }
 0x101   : > { %v640_v59 = vpop.permute.xlu1 %639  ;;  %v943_v60 = vsel %vm903_vm8, %v938_v56, %v940_v58 }
 0x102   : > { %v643_v61 = vsel %vm603_vm3, %v2367_v51, %v640_v59  ;;  %1760 = vmatprep.subr.bf16.mxu1 %v943_v60  ;;  %v1340_v59 = vld [vmem:[%s2657_s5 + $0xe0] sm:$0xff]  ;;  %v1341_v60 = vld [vmem:[%s2657_s5 + $0xe8] sm:$0xff] }
 0x103   : > { %1761 = vmatpush3.bf16.msra.mxu1 %v643_v61  ;;  %v1894_v61 = vpack.c.bf16 %v1341_v60, %v1340_v59 }
 0x104   : > { %v936_v62 = vpop.permute.xlu0 %935  ;;  %1827 = vmatprep.subr.bf16.mxu1 %v2087_v63 }
 0x105   : > { %v934_v0 = vpop.permute.xlu1 %933  ;;  %v942_v1 = vsel %vm903_vm8, %v936_v62, %v938_v56  ;;  %v1352_v56 = vld [vmem:[%s2657_s5 + $0x140] sm:$0xff] }
 0x106   : > { %1132 = vmatprep.subr.bf16.mxu0 %v942_v1  ;;  %v941_v2 = vsel %vm903_vm8, %v934_v0, %v936_v62  ;;  %1221 = vmatmul.mubr.bf16.vlgmr.msra.gmra.mrb[4].mxu1 %v2007_v40  ;;  %v1918_v58 = vpack.c.bf16 %v1353_v57, %v1352_v56  ;;  %v1325_v62 = vld [vmem:[%s2657_s5 + $0x68] sm:$0xff]  ;;  %v1354_v0 = vld [vmem:[%s2657_s5 + $0x150] sm:$0xff]  ;;  %v1355_v1 = vld [vmem:[%s2657_s5 + $0x158] sm:$0xff] }
 0x107   : > { %1133 = vmatpush1.bf16.msra.mxu0 %v941_v2  ;;  %1831 = vmatprep.mubr.msk.bf16.mxu1 %vm2088_vm9, %v2087_v63  ;;  %v1922_v2 = vpack.c.bf16 %v1355_v1, %v1354_v0 }
 0x108   : > { %v977_v51 = vpop.permute.xlu0 %976  ;;  %1903 = vmatprep.subr.bf16.mxu0 %v1902_v21 }
 0x109   : > { %v981_v3 = vsel %vm978_vm2, %v2347_v35, %v977_v51  ;;  %v1015_v4 = vpop.permute.xlu1 %1014  ;;  %v1312_v35 = vld [vmem:[%s2657_s5] sm:$0xff]  ;;  %v1342_v51 = vld [vmem:[%s2657_s5 + $0xf0] sm:$0xff] }
 0x10a   : > { %1135 = vmatmul.mubr.bf16.vlgmr.msra.gmra.mrb[0].mxu0 %v2007_v40  ;;  %1828 = vmatpush3.bf16.msra.mxu1 %v981_v3  ;;  %v1018_v5 = vsel %vm978_vm2, %v2357_v45, %v1015_v4  ;;  %v1330_v45 = vld [vmem:[%s2657_s5 + $0x90] sm:$0xff]  ;;  %v1872_v11 = vpack.c.bf16 %v1313_v9, %v1312_v35  ;;  %v1324_v40 = vld [vmem:[%s2657_s5 + $0x60] sm:$0xff]  ;;  %v1343_v3 = vld [vmem:[%s2657_s5 + $0xf8] sm:$0xff] }
 0x10b   : > { %1829 = vmatprep.subr.bf16.mxu1 %v2087_v63  ;;  %v1874_v13 = vpack.c.bf16 %v1331_v10, %v1330_v45  ;;  %1905 = vmatpush3.bf16.msra.mxu0 %v1902_v21  ;;  %v1896_v63 = vpack.c.bf16 %v1325_v62, %v1324_v40  ;;  %v1898_v4 = vpack.c.bf16 %v1343_v3, %v1342_v51  ;;  %v1356_v35 = vld [vmem:[%s2657_s5 + $0x160] sm:$0xff]  ;;  %v1358_v45 = vld [vmem:[%s2657_s5 + $0x170] sm:$0xff]  ;;  %v1359_v10 = vld [vmem:[%s2657_s5 + $0x178] sm:$0xff] }
 0x10c   : > { %1907 = vmatprep.subr.bf16.mxu0 %v1906_v27 }
 0x10e   : > { %1830 = vmatpush3.bf16.msra.mxu1 %v1018_v5  ;;  %v1326_v5 = vld [vmem:[%s2657_s5 + $0x70] sm:$0xff] }
 0x10f   : > { %1871 = vmatprep.subr.bf16.mxu1 %v1870_v8  ;;  %1909 = vmatpush3.bf16.msra.mxu0 %v1906_v27  ;;  %v1900_v7 = vpack.c.bf16 %v1327_v6, %v1326_v5  ;;  %v1357_v8 = vld [vmem:[%s2657_s5 + $0x168] sm:$0xff] }
 0x110   : > { %1911 = vmatprep.subr.bf16.mxu0 %v1910_v33  ;;  %v1926_v9 = vpack.c.bf16 %v1357_v8, %v1356_v35  ;;  %v1513_v35 = vld [vmem:[%s2658_s6 + $0x8] sm:$0xff]  ;;  %v1512_v8 = vld [vmem:[%s2658_s6] sm:$0xff] }
 0x111   : > { %1832 = vmatmul.mubr.msk.bf16.vlgmr.msra.gmra.mrb[8].mxu1 %vm1098_vm4, %v2365_v50  ;;  %v1332_v50 = vld [vmem:[%s2657_s5 + $0xa0] sm:$0xff] }
 0x112   : > { %1873 = vmatpush3.bf16.msra.mxu1 %v1872_v11  ;;  %v1878_v12 = vpack.c.bf16 %v1333_v19, %v1332_v50  ;;  %v1930_v11 = vpack.c.bf16 %v1359_v10, %v1358_v45 }
 0x113   : > { %1875 = vmatprep.subr.bf16.mxu1 %v1874_v13  ;;  %1913 = vmatpush3.bf16.msra.mxu0 %v1910_v33 }
 0x114   : > { %1915 = vmatprep.subr.bf16.mxu0 %v1914_v48 }
 0x116   : > { %1877 = vmatpush3.bf16.msra.mxu1 %v1876_v20 }
 0x117   : > { %1879 = vmatprep.subr.bf16.mxu1 %v1878_v12  ;;  %1917 = vmatpush3.bf16.msra.mxu0 %v1914_v48 }
 0x118   : > { %1919 = vmatprep.subr.bf16.mxu0 %v1918_v58 }
 0x119   : > { %v1275_v26 = vpop.permute.xlu0 %1274 }
 0x11a   : > { %1881 = vmatpush3.bf16.msra.mxu1 %v1880_v32  ;;  %v1293_v50 = vpop.permute.xlu1 %1292 }
 0x11b   : > { %1883 = vmatprep.subr.bf16.mxu1 %v1882_v34  ;;  %1921 = vmatpush3.bf16.msra.mxu0 %v1918_v58 }
 0x11c   : > { %1923 = vmatprep.subr.bf16.mxu0 %v1922_v2 }
 0x11e   : > { %1885 = vmatpush3.bf16.msra.mxu1 %v1884_v41  ;;  %v1280_v31 = vpop.permute.xlu1 %1279 }
 0x11f   : > { %1887 = vmatprep.subr.bf16.mxu1 %v1886_v42  ;;  %1925 = vmatpush3.bf16.msra.mxu0 %v1922_v2  ;;  %v1298_v42 = vpop.permute.xlu0 %1297 }
 0x120   : > { %1927 = vmatprep.subr.bf16.mxu0 %v1926_v9 }
 0x122   : > { %1889 = vmatpush3.bf16.msra.mxu1 %v1888_v44 }
 0x123   : > { %1891 = vmatprep.subr.bf16.mxu1 %v1890_v30  ;;  %1929 = vmatpush3.bf16.msra.mxu0 %v1926_v9 }
 0x124   : > { %1931 = vmatprep.subr.bf16.mxu0 %v1930_v11 }
 0x126   : > { %1893 = vmatpush3.bf16.msra.mxu1 %v1892_v55 }
 0x127   : > { %1895 = vmatprep.subr.bf16.mxu1 %v1894_v61  ;;  %1933 = vmatpush3.bf16.msra.mxu0 %v1930_v11 }
 0x12a   : > { %1897 = vmatpush3.bf16.msra.mxu1 %v1896_v63 }
 0x12b   : > { %1899 = vmatprep.subr.bf16.mxu1 %v1898_v4 }
 0x12e   : > { %1901 = vmatpush3.bf16.msra.mxu1 %v1900_v7 }
 0x18c   : > { %v1179_v13 = vpop.f32.mrb[0].mxu1 }
 0x18d   : > { %v1181_v14 = vpop.f32.mrb[1].mxu1 }
 0x18e   : > { %v1183_v15 = vpop.f32.mrb[2].mxu1 }
 0x18f   : > { %v1185_v17 = vpop.f32.mrb[3].mxu1 }
 0x1d9   : > { %v1762_v18 = vpop.f32.mrb[4].mxu1 }
 0x1da   : > { %v1763_v19 = vpop.f32.mrb[5].mxu1 }
 0x1db   : > { %v1764_v20 = vadd.f32 %v1763_v19, %v1762_v18  ;;  %v1765_v21 = vpop.f32.mrb[6].mxu1  ;;  %v1540_v19 = vlaneseq }
 0x1dc   : > { %v1766_v22 = vpop.f32.mrb[7].mxu1 }
 0x1dd   : > { %v1136_v12 = vpop.f32.mrb[0].mxu0  ;;  %v1767_v24 = vadd.f32 %v1766_v22, %v1765_v21  ;;  %v1541_v22 = vshrl.u32 %v1540_v19, 7 }
 0x1de   : > { %v1180_v25 = vadd.f32 %v1179_v13, %v1136_v12  ;;  %v1138_v27 = vpop.f32.mrb[1].mxu0  ;;  %v1536_v12 = vld [vmem:[%s2659_s7] sm:$0x1] }
 0x1df   : > { %v1182_v28 = vadd.f32 %v1181_v14, %v1138_v27  ;;  %v1140_v29 = vpop.f32.mrb[2].mxu0 }
 0x1e0   : > { %v1282_v16 = vmul.f32 %v1275_v26, %v1180_v25  ;;  %v1184_v32 = vadd.f32 %v1183_v15, %v1140_v29  ;;  %v1142_v33 = vpop.f32.mrb[3].mxu0 }
 0x1e1   : > { %v1283_v34 = vmul.f32 %v1275_v26, %v1182_v28  ;;  %v1186_v36 = vadd.f32 %v1185_v17, %v1142_v33  ;;  %v1539_v28 = vld [vmem:[%s2660_s8] sm:$0xff] }
 0x1e2   : > { %v2566_v37 = vadd.f32 %v1293_v50, %v1282_v16  ;;  %v1285_v38 = vmul.f32 %v1280_v31, %v1184_v32  ;;  %v1548_v32 = vld [vmem:[%s2661_s9] sm:$0xff] }
 0x1e3   : > { %v1286_v39 = vmul.f32 %v1280_v31, %v1186_v36  ;;  %v2568_v41 = vadd.f32 %v1293_v50, %v1283_v34 }
 0x1e4   : > { %v1263_v23 = vpop.f32.mrb[8].mxu1  ;;  %v1306_v48 = vmax.f32 %v2566_v37, 0.0  ;;  %v1303_v49 = vadd.f32 %v1298_v42, %v1285_v38 }
 0x1e5   : > { %v1304_v43 = vadd.f32 %v1298_v42, %v1286_v39  ;;  %v1264_v44 = vadd.f32 %v1764_v20, %v1263_v23  ;;  %v1833_v46 = vpop.f32.mrb[9].mxu1  ;;  %v1307_v47 = vmax.f32 %v2568_v41, 0.0 }
 0x1e6   : > { %v1266_v52 = vpop.f32.mrb[10].mxu1  ;;  %v1309_v58 = vmax.f32 %v1303_v49, 0.0 }
 0x1e7   : > { %v1284_v30 = vmul.f32 %v1275_v26, %v1264_v44  ;;  %v1267_v53 = vadd.f32 %v1767_v24, %v1266_v52  ;;  %v1834_v54 = vpop.f32.mrb[11].mxu1  ;;  %1424 = vmatprep.mubr.f32.mxu1 %v1307_v47  ;;  %v1310_v55 = vmax.f32 %v1304_v43, 0.0  ;;  %v1542_v26 = vsub.s32 0, %v1541_v22 }
 0x1e8   : > { %1425 = vmatmul.mubr.f32.vlgmr.msra.gmra.mrb[12].mxu1 %v1306_v48 }
 0x1e9   : > { %v1287_v56 = vmul.f32 %v1280_v31, %v1267_v53  ;;  %1429 = vmatprep.mubr.f32.mxu1 %v1310_v55  ;;  %v2576_v57 = vadd.f32 %v1293_v50, %v1284_v30 }
 0x1eb   : > { %v1305_v59 = vadd.f32 %v1298_v42, %v1287_v56  ;;  %v1308_v60 = vmax.f32 %v2576_v57, 0.0 }
 0x1ec   : > { %1430 = vmatmul.mubr.f32.gmra.mrb[14].mxu1 %v1309_v58 }
 0x1ed   : > { %v1311_v61 = vmax.f32 %v1305_v59, 0.0  ;;  %1867 = vmatprep.mubr.f32.mxu0 %v1308_v60 }
 0x1ef   : > { %1868 = vmatmul.mubr.f32.vlgmr.msra.gmra.mrb[4].mxu0 %v1311_v61 }
 0x2bb   : > { %v1803_v40 = vpop.f32.mrb[12].mxu1 }
 0x2bc   : > { %v1804_v62 = vpop.f32.mrb[13].mxu1 }
 0x2bd   : > { %v1805_v63 = vadd.f32 %v1804_v62, %v1803_v40 }
 0x2bf   : > { %v1806_v0 = vpop.f32.mrb[14].mxu1 }
 0x2c0   : > { %v1807_v1 = vpop.f32.mrb[15].mxu1 }
 0x2c1   : > { %v1808_v2 = vadd.f32 %v1807_v1, %v1806_v0 }
 0x2c2   : > { %v1869_v51 = vpop.f32.mrb[4].mxu0 }
 0x2c3   : > { %v1507_v3 = vadd.f32 %v1869_v51, %v1808_v2  ;;  %v1501_v4 = vpop.f32.mrb[5].mxu0 }
 0x2c4   : > { %v1502_v5 = vadd.f32 %v1805_v63, %v1501_v4 }
 0x2c5   : > { %v1511_v6 = vmul.f32 0.00390625, %v1507_v3 }
 0x2c6   : > { %v1510_v7 = vmul.f32 0.00390625, %v1502_v5 }
 0x2c7   : > { %1521 = vperm.xlu0 %1990, %v1511_v6  }
 0x2c8   : > { %1516 = vperm.xlu1 %1991, %v1510_v7  }
 0x346   : > { %v1522_v9 = vpop.permute.xlu0 %1521 }
 0x347   : > { %v1525_v45 = vmul.f32 %v1522_v9, %v1513_v35  ;;  %v1517_v10 = vpop.permute.xlu1 %1516 }
 0x348   : > { %v1524_v11 = vmul.f32 %v1517_v10, %v1512_v8 }
 0x349   : > { %v1528_v13 = vsel %vm1526_vm10, %v1525_v45, 0.0 }
 0x34a   : > { %v1527_v14 = vsel %vm1526_vm10, %v1524_v11, 0.0 }
 0x34b   : > { %v1529_v15 = vadd.f32 %v1528_v13, %v1527_v14 }
 0x34d   : > { %v1530_v17 = vrot.slane %v1529_v15, 4 }
 0x34f   : > { %v1531_v18 = vadd.f32 %v1530_v17, %v1529_v15 }
 0x351   : > { %v1532_v50 = vrot.slane %v1531_v18, 2 }
 0x353   : > { %v1533_v20 = vadd.f32 %v1532_v50, %v1531_v18 }
 0x355   : > { %v1534_v21 = vrot.slane %v1533_v20, 1 }
 0x357   : > { %v1535_v24 = vadd.f32 %v1534_v21, %v1533_v20 }
 0x359   : > { %v1537_v25 = vadd.f32 %v1536_v12, %v1535_v24 }
 0x35b   : > { %v1538_v27 = vmax.f32 %v1537_v25, 0.0 }
 0x35d   : > { %v1543_v29 = vrot.slane %v1538_v27, %v1542_v26 }
 0x35f   : > { %v1544_v31 = vmul.f32 %v1543_v29, %v1539_v28 }
 0x361   : > { %v1545_v16 = vsel %vm1526_vm10, %v1544_v31, 0.0 }
 0x362   : > { %1546 = vadd.xlane.f32.xlu1 %v1545_v16 }
 0x3ef   : > { %v1547_v33 = vpop.xlane.xlu1 %1546 }
 0x3f0   : > { %v1549_v34 = vadd.f32 %v1548_v32, %v1547_v33 }
 0x3f2   : > { %v1740_v36 = vmul.f32 -1.442695, %v1549_v34 }
 0x3f4   : > { %2010 = vpow2.f32 %v1740_v36 }
 0x3fe   : > { %v2011_v38 = vpop.eup %2010 }
 0x3ff   : > { %v1553_v39 = vadd.f32 1.0, %v2011_v38 }
 0x401   : > { %2012 = vrcp.f32 %v1553_v39 }
 0x40b   : > { %v2013_v42 = vpop.eup %2012 }
 0x40c   : > { %v1556_v23 = vadd.f32 1.0, %v2013_v42 }
 0x40e   : > { %1559 = vperm.xlu0 %1990, %v1556_v23  }
 0x48d   : > { %v1560_v43 = vpop.permute.xlu0 %1559 }
 0x48e   : > { %v1562_v44 = vmul.f32 %v1560_v43, %v1306_v48  ;;  %v1563_v46 = vmul.f32 %v1560_v43, %v1307_v47  ;;  %v1564_v49 = vmul.f32 %v1560_v43, %v1308_v60 }
 0x490   : > { %v1567_v52 = vcombine.low %v1562_v44, %v1563_v46  ;;  %1570 = vst [vmem:[%s367_s12 + $0x8] sm:$0xf] %v1564_v49 }
 0x492   : > { %1569 = vst [vmem:[%s367_s12] sm:$0xff] %v1567_v52 }
 0x493   : > { %2027 = shalt.err (!%p2024_p3)
}
 0x494   : > { %s2028_s18 = scalar_lea.hbm %s2610_s21, 192  ;;  %s2032_s26 = scalar_lea.hbm %s2662_s10, 384 }
 0x495   : > { %p2029_p4 = scmp.ne.s32.totalorder %s2610_s21, %s2028_s18  ;;  %p2033_p9 = scmp.lt.u32.totalorder %s2610_s21, %s2662_s10 }
 0x496   : > { %p2034_p10 = scmp.lt.u32.totalorder %s2032_s26, %s2028_s18  ;;  %p2036_p12 = scmp.lt.u32.totalorder %s2028_s18, %s2610_s21 }
 0x497   : > { %p2030_p7 = pnand %p2029_p4, %p2183_p5 }
 0x498   : > { %p2035_p11 = por %p2034_p10, %p2033_p9 }
 0x499   : > { %p2031_p8 = pneg %p2030_p7 }
 0x49a   : > { %p2037_p13 = por %p2036_p12, %p2035_p11 }
 0x49c   : > { %p2038_p0 = pnand %p2037_p13, %p2031_p8 }
 0x49e   : > { %2041 = shalt.err (!%p2038_p0)
}
 0x49f   : > { %1940 = dma.vmem_to_hbm [thread:$0]  (%p2183_p5), %s2612_s25, 192, %s2610_s21, %s1572_s17  }
 0x4a0 PF: > { %p1946_p1 = scmp.ge.s32.totalorder %s2076_s16, 2  ;;  %s1598_s28 = sand.u32 1, %s2064_s13  }
 0x4a1   : > { %s1599_s11 = scalar_lea.sflag [#allocation4], %s1598_s28 }
 0x4a2   : > { %p1943_p2 = pnand %p1946_p1, %p2187_p6 }
 0x4a4   : > { %2059 = dma.done.wait (!%p1943_p2), %s1599_s11, 192  }
 0x4a5   : > { %2061 = vsyncadd (!%p1943_p2), %s1599_s11, 4294967104  ;;  %p20_p3 = scmp.ge.s32.totalorder %s2170_s19, 4   ;;  %s2665_s13 = smov %s2068_s14 }
 0x4a6   : > { %s2666_s14 = smov %s2072_s15  ;;  %s2667_s15 = smov %s2181_s22 }
 0x4a7   : > { %s2668_s16 = smov %s2170_s19  ;;  %22 = sbr.rel (!%p20_p3) target bundleno = 3 (0x3), region = 98 }
 0x4ae   :  { %1604 = vsyncpa [#allocation4], 1 }
 0x4af   :  { %1606 = vsyncpa [#allocation4 + $0x1], 1 }

</bundles_post_ra>
